<compile_context>
chip_gen: v7x
topology: tpu7x:2x2x1
jax: 0.10.0
libtpu: 0.0.40
codegen_flags: <defaults>
</compile_context>

<pallas_src>
import jax
import jax.numpy as jnp
from jax.experimental import pallas as pl
from jax.experimental.pallas import tpu as pltpu


_VMEM_LIMIT = 32 * 1024 * 1024    # scoped VMEM requested from the compiler
_TILE_BUDGET = 20 * 1024 * 1024   # budget for pipelined buffers + resident weights
_MAX_TL = 2048                    # lane-tile cap (multiple of 128)
_TARGET_LANES = 1024              # per-grid-step lane work target


def _conv1x1_kernel(x_ref, w_ref, b_ref, o_ref):
    # x_ref: (BN, C_in, TL)  w_ref: (C_out, C_in)  b_ref: (C_out, 1)
    # o_ref: (BN, C_out, TL)
    w = w_ref[...]
    b = b_ref[...]
    bn = x_ref.shape[0]
    for n in range(bn):  # BN is a small static block count -> unrolled
        y = jnp.dot(w, x_ref[n], preferred_element_type=jnp.float32)
        o_ref[n] = (y + b).astype(o_ref.dtype)


def _select_tiles(N, C_in, L, C_out, x_itemsize, out_itemsize):
    """Pick (lane tile, batch-rows-per-step) under a VMEM budget that includes
    the double-buffered resident weight/bias."""
    fixed = 2 * C_out * C_in * x_itemsize + 2 * C_out * 4  # weight + bias, 2 bufs
    avail = max(_TILE_BUDGET - fixed, 1 << 20)
    per_col = 2 * (C_in * x_itemsize + C_out * out_itemsize)  # x + out, 2 bufs

    if L <= 128:
        tl = L  # full-dim lane block (always legal)
    else:
        tl_vmem = max(128, (avail // per_col) // 128 * 128)
        tl = min(_MAX_TL, (L // 128) * 128, tl_vmem)

    # Batch-row blocking to amortize per-grid-step overhead on small lane tiles.
    want_bn = max(1, -(-_TARGET_LANES // tl))
    max_bn_vmem = max(1, avail // max(per_col * tl, 1))
    want_bn = min(want_bn, max_bn_vmem, N)
    bn = 1
    for cand in range(want_bn, 0, -1):
        if N % cand == 0:  # keep the batch axis exactly blocked
            bn = cand
            break
    return tl, bn


def encoder_forward(x, weight, bias):
    """x: (N, C_in, L); weight: (C_out, C_in) or (C_out, C_in, 1); bias: (C_out,).
    Returns (N, C_out, L) in x's dtype (f32 accumulation inside)."""
    N, C_in, L = x.shape
    if weight.ndim == 3:  # PyTorch Conv1d weight layout (C_out, C_in, 1)
        weight = weight.reshape(weight.shape[0], weight.shape[1])
    C_out = weight.shape[0]
    out_dtype = x.dtype
    bias2d = bias.reshape(C_out, 1).astype(jnp.float32)

    # Single-partial-tile problems: pallas_call fixed cost > fused XLA einsum.
    if N * L < 128:
        y = jnp.einsum("oc,ncl->nol", weight.astype(jnp.float32), x.astype(jnp.float32))
        return (y + bias2d[None]).astype(out_dtype)

    x_itemsize = jnp.dtype(x.dtype).itemsize
    out_itemsize = jnp.dtype(out_dtype).itemsize
    tl, bn = _select_tiles(N, C_in, L, C_out, x_itemsize, out_itemsize)
    num_l = -(-L // tl)          # cdiv; final tile may be partial (masked by Pallas)
    num_nb = N // bn

    return pl.pallas_call(
        _conv1x1_kernel,
        out_shape=jax.ShapeDtypeStruct((N, C_out, L), out_dtype),
        grid_spec=pltpu.PrefetchScalarGridSpec(
            num_scalar_prefetch=0,
            grid=(num_l, num_nb),  # L-tiles first: keeps both v7x TCs busy when N == 1
            in_specs=[
                pl.BlockSpec((bn, C_in, tl), lambda l, n: (n, 0, l)),
                pl.BlockSpec((C_out, C_in), lambda l, n: (0, 0)),
                pl.BlockSpec((C_out, 1), lambda l, n: (0, 0)),
            ],
            out_specs=pl.BlockSpec((bn, C_out, tl), lambda l, n: (n, 0, l)),
        ),
        compiler_params=pltpu.CompilerParams(
            dimension_semantics=("parallel", "parallel"),
            vmem_limit_bytes=_VMEM_LIMIT,
        ),
    )(x, weight, bias2d)


def _ref(x, weight, bias):
    if weight.ndim == 3:
        weight = weight.reshape(weight.shape[0], weight.shape[1])
    return (jnp.einsum("oc,ncl->nol", weight.astype(jnp.float32), x.astype(jnp.float32))
            + bias.astype(jnp.float32)[None, :, None]).astype(x.dtype)


if __name__ == "__main__":
    key = jax.random.PRNGKey(0)
    kx, kw, kb, kx2, kx3 = jax.random.split(key, 5)

    # Shapes consistent with the module: Conv1d input is (N, C_in, L).
    N, C_in, hidden = 2, 4, 32
    weight = jax.random.normal(kw, (hidden, C_in, 1), dtype=jnp.float32) * 0.1
    bias = jax.random.normal(kb, (hidden,), dtype=jnp.float32) * 0.1

    ok = True

    # 1) Tiny problem (L=16): fast einsum path (single partial tile).
    x_small = jax.random.normal(kx, (N, C_in, 16), dtype=jnp.float32)
    out = jax.block_until_ready(encoder_forward(x_small, weight, bias))
    ok &= out.shape == (N, hidden, 16)
    ok &= bool(jnp.allclose(out, _ref(x_small, weight, bias), atol=1e-4, rtol=1e-4))

    # 2) Lane-aligned Pallas path (L multiple of 128).
    x_aligned = jax.random.normal(kx2, (N, C_in, 256), dtype=jnp.float32)
    out2 = jax.block_until_ready(encoder_forward(x_aligned, weight, bias))
    ok &= out2.shape == (N, hidden, 256)
    ok &= bool(jnp.allclose(out2, _ref(x_aligned, weight, bias), atol=1e-4, rtol=1e-4))

    # 3) Ragged-L Pallas path (L=272 -> 256-lane tiles + masked partial tail).
    x_ragged = jax.random.normal(kx3, (N, C_in, 272), dtype=jnp.float32)
    out3 = jax.block_until_ready(encoder_forward(x_ragged, weight, bias))
    ok &= out3.shape == (N, hidden, 272)
    ok &= bool(jnp.allclose(out3, _ref(x_ragged, weight, bias), atol=1e-4, rtol=1e-4))

    assert ok
    print("KERNEL_OK")
</pallas_src>

<mosaic_0001>
module attributes {stable_mosaic.version = 11 : i64} {
  func.func @_conv1x1_kernel(%arg0: i32, %arg1: i32, %arg2: memref<2x4x256xf32, #tpu.memory_space<vmem>>, %arg3: memref<32x4xf32, #tpu.memory_space<vmem>>, %arg4: memref<32x1xf32, #tpu.memory_space<vmem>>, %arg5: memref<2x32x256xf32, #tpu.memory_space<vmem>>) attributes {dimension_semantics = [#tpu.dimension_semantics<parallel>, #tpu.dimension_semantics<parallel>], iteration_bounds = array<i64: 1, 1>, scalar_prefetch = 0 : i64, scratch_operands = 0 : i64, tpu.core_type = #tpu.core_type<tc>, window_params = [{transform_indices = @transform_0, window_bounds = array<i64: 2, 4, 256>}, {pipeline_mode = #tpu.pipeline_mode<synchronous>, transform_indices = @transform_1, window_bounds = array<i64: 32, 4>}, {pipeline_mode = #tpu.pipeline_mode<synchronous>, transform_indices = @transform_2, window_bounds = array<i64: 32, 1>}, {transform_indices = @transform_3, window_bounds = array<i64: 2, 32, 256>}]} {
    %c0 = arith.constant 0 : index
    %c0_0 = arith.constant 0 : index
    %0 = vector.load %arg3[%c0, %c0_0] : memref<32x4xf32, #tpu.memory_space<vmem>>, vector<32x4xf32>
    %c0_1 = arith.constant 0 : index
    %c0_2 = arith.constant 0 : index
    %1 = vector.load %arg4[%c0_1, %c0_2] : memref<32x1xf32, #tpu.memory_space<vmem>>, vector<32x1xf32>
    %c0_3 = arith.constant 0 : index
    %c0_4 = arith.constant 0 : index
    %c0_5 = arith.constant 0 : index
    %2 = vector.load %arg2[%c0_3, %c0_4, %c0_5] : memref<2x4x256xf32, #tpu.memory_space<vmem>>, vector<1x4x256xf32>
    %3 = vector.shape_cast %2 : vector<1x4x256xf32> to vector<4x256xf32>
    %cst = arith.constant dense<0.000000e+00> : vector<32x256xf32>
    %4 = tpu.matmul %0, %3, %cst {dimension_numbers = #tpu.dot_dimension_numbers<[1], [0], [0], [1], [0, 0, 1, 1], [], []>} : vector<32x4xf32>, vector<4x256xf32>, vector<32x256xf32> -> vector<32x256xf32>
    %5 = vector.broadcast %1 : vector<32x1xf32> to vector<32x256xf32>
    %6 = arith.addf %4, %5 : vector<32x256xf32>
    %c0_6 = arith.constant 0 : index
    %c0_7 = arith.constant 0 : index
    %c0_8 = arith.constant 0 : index
    %7 = vector.load %arg5[%c0_6, %c0_7, %c0_8] : memref<2x32x256xf32, #tpu.memory_space<vmem>>, vector<1x32x256xf32>
    %8 = vector.shape_cast %7 : vector<1x32x256xf32> to vector<32x256xf32>
    %9 = vector.shape_cast %6 : vector<32x256xf32> to vector<1x32x256xf32>
    tpu.vector_store %arg5[%c0_6, %c0_7, %c0_8], %9 {strides = array<i32>} : memref<2x32x256xf32, #tpu.memory_space<vmem>>, vector<1x32x256xf32>,
    %c1 = arith.constant 1 : index
    %c0_9 = arith.constant 0 : index
    %c0_10 = arith.constant 0 : index
    %10 = vector.load %arg2[%c1, %c0_9, %c0_10] : memref<2x4x256xf32, #tpu.memory_space<vmem>>, vector<1x4x256xf32>
    %11 = vector.shape_cast %10 : vector<1x4x256xf32> to vector<4x256xf32>
    %cst_11 = arith.constant dense<0.000000e+00> : vector<32x256xf32>
    %12 = tpu.matmul %0, %11, %cst_11 {dimension_numbers = #tpu.dot_dimension_numbers<[1], [0], [0], [1], [0, 0, 1, 1], [], []>} : vector<32x4xf32>, vector<4x256xf32>, vector<32x256xf32> -> vector<32x256xf32>
    %13 = vector.broadcast %1 : vector<32x1xf32> to vector<32x256xf32>
    %14 = arith.addf %12, %13 : vector<32x256xf32>
    %c1_12 = arith.constant 1 : index
    %c0_13 = arith.constant 0 : index
    %c0_14 = arith.constant 0 : index
    %15 = vector.load %arg5[%c1_12, %c0_13, %c0_14] : memref<2x32x256xf32, #tpu.memory_space<vmem>>, vector<1x32x256xf32>
    %16 = vector.shape_cast %15 : vector<1x32x256xf32> to vector<32x256xf32>
    %17 = vector.shape_cast %14 : vector<32x256xf32> to vector<1x32x256xf32>
    tpu.vector_store %arg5[%c1_12, %c0_13, %c0_14], %17 {strides = array<i32>} : memref<2x32x256xf32, #tpu.memory_space<vmem>>, vector<1x32x256xf32>,
    return
  }
  func.func @transform_0(%arg0: i32, %arg1: i32) -> (i32, i32, i32) {
    %c0_i32 = arith.constant 0 : i32
    %c0_i32_0 = arith.constant 0 : i32
    return %arg1, %c0_i32, %arg0 : i32, i32, i32
  }
  func.func @transform_1(%arg0: i32, %arg1: i32) -> (i32, i32) {
    %c0_i32 = arith.constant 0 : i32
    %c0_i32_0 = arith.constant 0 : i32
    %c0_i32_1 = arith.constant 0 : i32
    return %c0_i32, %c0_i32_0 : i32, i32
  }
  func.func @transform_2(%arg0: i32, %arg1: i32) -> (i32, i32) {
    %c0_i32 = arith.constant 0 : i32
    %c0_i32_0 = arith.constant 0 : i32
    %c0_i32_1 = arith.constant 0 : i32
    return %c0_i32, %c0_i32_0 : i32, i32
  }
  func.func @transform_3(%arg0: i32, %arg1: i32) -> (i32, i32, i32) {
    %c0_i32 = arith.constant 0 : i32
    %c0_i32_0 = arith.constant 0 : i32
    return %arg1, %c0_i32, %arg0 : i32, i32, i32
  }
}

</mosaic_0001>

<bundles_post_ra>
// kernel: tpu_custom_call.1
= control target key start
LH: loop header
LB: loop body
LE: loop exit
PB: predicated region body
PF: predicated region fallthrough
CT: control target
= control target key end

     0   :  { %vm59_vm0 = vcmask 1043456   ;;  %v329_v4 = vmov 0.0   ;;  %vm46_vm1 = vcmask 31744   ;;  %v330_v6 = vmov 0   ;;  %s408_s0 = inlined_call_operand.vmem [shape: f32[2,4,256], index: 0, kind: input, shape index: {}]   ;;  %s409_s1 = inlined_call_operand.vmem [shape: f32[32,4], index: 1, kind: input, shape index: {}]   ;;  %s410_s2 = inlined_call_operand.vmem [shape: f32[32,1], index: 2, kind: input, shape index: {}]   ;;  %s411_s3 = inlined_call_operand.hbm [shape: f32[2,32,256], index: 3, kind: output, shape index: {}]  }
   0x1   :  { %v23_v0 = vld [vmem:[%s408_s0] sm:$0xff]  ;;  %v289_v1 = vld [vmem:[%s408_s0 + $0x8] sm:$0xff]  ;;  %128 = vmatprep.mubr.f32.mxu0 %v329_v4  ;;  %233 = vmatprep.mubr.f32.mxu1 %v329_v4 }
   0x2   :  { %v45_v2 = vcombine.high %v23_v0, %v23_v0  ;;  %v164_v3 = vcombine.high %v289_v1, %v289_v1  ;;  %v15_v5 = vld [vmem:[%s409_s1] sm:$0xff]  ;;  %301 = vset.pattern.permute.xlu0 %v330_v6  ;;  %302 = vset.pattern.permute.xlu1 %v330_v6 }
   0x4   :  { %283 = vmatprep.subr.msk.mxu0 %vm59_vm0, %v45_v2  ;;  %290 = vmatprep.subr.msk.mxu1 %vm59_vm0, %v164_v3 }
   0x5   :  { %8 = vsyncpa [#allocation3], 0  ;;  %284 = vmatpush1.msk.msra.mxu0 %vm59_vm0, %v23_v0  ;;  %291 = vmatpush1.msk.msra.mxu1 %vm59_vm0, %v289_v1  ;;  %v19_v7 = vld [vmem:[%s410_s2] sm:$0xff]  ;;  %v21_v8 = vld [vmem:[%s410_s2 + $0x10] sm:$0xff] }
   0x6   :  { %285 = vmatmul.mubr.msk.f32.vlgmr.msra.gmra.mrb[0].mxu0 %vm46_vm1, %v15_v5  ;;  %292 = vmatmul.mubr.msk.f32.vlgmr.msra.gmra.mrb[0].mxu1 %vm46_vm1, %v15_v5  ;;  %v16_v9 = vld [vmem:[%s409_s1 + $0x8] sm:$0xff]  ;;  %v22_v11 = vld [vmem:[%s410_s2 + $0x18] sm:$0xff]  ;;  %v17_v12 = vld [vmem:[%s409_s1 + $0x10] sm:$0xff] }
   0x7   :  { %134 = vmatprep.mubr.f32.mxu0 %v329_v4  ;;  %239 = vmatprep.mubr.f32.mxu1 %v329_v4  ;;  %v20_v10 = vld [vmem:[%s410_s2 + $0x8] sm:$0xff]  ;;  %v18_v13 = vld [vmem:[%s409_s1 + $0x18] sm:$0xff]  ;;  %s331_s1 = smov [#allocation2]  }
   0x8   :  { %26 = vperm.xlu0 %301, %v19_v7   ;;  %36 = vperm.xlu1 %302, %v21_v8   ;;  %s272_s30 = sshll.u32 %s331_s1, 4  ;;  %s273_s30 = int_to_ptr.vmem [resolvable:$true] %s272_s30 }
   0x9   :  { %s305_s4 = scalar_lea.vmem %s273_s30, 2048  ;;  %p310_p1 = scmp.lt.s32.totalorder %s273_s30, %s273_s30 }
   0xa   :  { %286 = vmatmul.mubr.msk.f32.gmra.mrb[2].mxu0 %vm46_vm1, %v16_v9  ;;  %293 = vmatmul.mubr.msk.f32.gmra.mrb[2].mxu1 %vm46_vm1, %v16_v9  ;;  %p306_p0 = scmp.ne.s32.totalorder %s273_s30, %s305_s4  ;;  %p311_p2 = scmp.lt.s32.totalorder %s305_s4, %s305_s4 }
   0xb   :  { %140 = vmatprep.mubr.f32.mxu0 %v329_v4  ;;  %245 = vmatprep.mubr.f32.mxu1 %v329_v4 }
   0xc   :  { %31 = vperm.xlu0 %301, %v20_v10   ;;  %41 = vperm.xlu1 %302, %v22_v11   ;;  %p312_p3 = por %p311_p2, %p310_p1 }
   0xe   :  { %287 = vmatmul.mubr.msk.f32.gmra.mrb[4].mxu0 %vm46_vm1, %v17_v12  ;;  %294 = vmatmul.mubr.msk.f32.gmra.mrb[4].mxu1 %vm46_vm1, %v17_v12  ;;  %p313_p4 = pnand %p312_p3, %p306_p0 }
   0xf   :  { %146 = vmatprep.mubr.f32.mxu0 %v329_v4  ;;  %251 = vmatprep.mubr.f32.mxu1 %v329_v4 }
  0x12   :  { %288 = vmatmul.mubr.msk.f32.gmra.mrb[6].mxu0 %vm46_vm1, %v18_v13  ;;  %295 = vmatmul.mubr.msk.f32.gmra.mrb[6].mxu1 %vm46_vm1, %v18_v13 }
  0x87   :  { %v27_v14 = vpop.permute.xlu0 %26  ;;  %v37_v24 = vpop.permute.xlu1 %36 }
  0x8b   :  { %v32_v23 = vpop.permute.xlu0 %31  ;;  %v42_v41 = vpop.permute.xlu1 %41 }
  0xd9   :  { %v130_v15 = vpop.f32.mrb[0].mxu0  ;;  %v235_v16 = vpop.f32.mrb[0].mxu1 }
  0xda   :  { %v131_v17 = vadd.f32 %v130_v15, %v27_v14  ;;  %v236_v18 = vadd.f32 %v235_v16, %v27_v14  ;;  %v132_v19 = vpop.f32.mrb[1].mxu0  ;;  %v237_v20 = vpop.f32.mrb[1].mxu1 }
  0xdb   :  { %v133_v21 = vadd.f32 %v132_v19, %v27_v14  ;;  %v238_v22 = vadd.f32 %v237_v20, %v27_v14 }
  0xdc   :  { %153 = vst [vmem:[#allocation2] sm:$0xff] %v131_v17  ;;  %259 = vst [vmem:[#allocation2 + $0x40] sm:$0xff] %v236_v18 }
  0xdd   :  { %154 = vst [vmem:[#allocation2 + $0x8] sm:$0xff] %v133_v21  ;;  %260 = vst [vmem:[#allocation2 + $0x48] sm:$0xff] %v238_v22  ;;  %v136_v25 = vpop.f32.mrb[2].mxu0  ;;  %v241_v26 = vpop.f32.mrb[2].mxu1 }
  0xde   :  { %v137_v27 = vadd.f32 %v136_v25, %v32_v23  ;;  %v242_v28 = vadd.f32 %v241_v26, %v32_v23  ;;  %v138_v29 = vpop.f32.mrb[3].mxu0  ;;  %v243_v30 = vpop.f32.mrb[3].mxu1 }
  0xdf   :  { %v139_v31 = vadd.f32 %v138_v29, %v32_v23  ;;  %v244_v32 = vadd.f32 %v243_v30, %v32_v23 }
  0xe0   :  { %155 = vst [vmem:[#allocation2 + $0x10] sm:$0xff] %v137_v27  ;;  %261 = vst [vmem:[#allocation2 + $0x50] sm:$0xff] %v242_v28 }
  0xe1   :  { %156 = vst [vmem:[#allocation2 + $0x18] sm:$0xff] %v139_v31  ;;  %262 = vst [vmem:[#allocation2 + $0x58] sm:$0xff] %v244_v32  ;;  %v142_v33 = vpop.f32.mrb[4].mxu0  ;;  %v247_v34 = vpop.f32.mrb[4].mxu1 }
  0xe2   :  { %v143_v35 = vadd.f32 %v142_v33, %v37_v24  ;;  %v248_v36 = vadd.f32 %v247_v34, %v37_v24  ;;  %v144_v37 = vpop.f32.mrb[5].mxu0  ;;  %v249_v38 = vpop.f32.mrb[5].mxu1 }
  0xe3   :  { %v145_v39 = vadd.f32 %v144_v37, %v37_v24  ;;  %v250_v40 = vadd.f32 %v249_v38, %v37_v24 }
  0xe4   :  { %157 = vst [vmem:[#allocation2 + $0x20] sm:$0xff] %v143_v35  ;;  %263 = vst [vmem:[#allocation2 + $0x60] sm:$0xff] %v248_v36 }
  0xe5   :  { %158 = vst [vmem:[#allocation2 + $0x28] sm:$0xff] %v145_v39  ;;  %264 = vst [vmem:[#allocation2 + $0x68] sm:$0xff] %v250_v40  ;;  %v148_v42 = vpop.f32.mrb[6].mxu0  ;;  %v253_v43 = vpop.f32.mrb[6].mxu1 }
  0xe6   :  { %v149_v44 = vadd.f32 %v148_v42, %v42_v41  ;;  %v254_v45 = vadd.f32 %v253_v43, %v42_v41  ;;  %v150_v46 = vpop.f32.mrb[7].mxu0  ;;  %v255_v47 = vpop.f32.mrb[7].mxu1 }
  0xe7   :  { %v151_v48 = vadd.f32 %v150_v46, %v42_v41  ;;  %v256_v49 = vadd.f32 %v255_v47, %v42_v41 }
  0xe8   :  { %159 = vst [vmem:[#allocation2 + $0x30] sm:$0xff] %v149_v44  ;;  %265 = vst [vmem:[#allocation2 + $0x70] sm:$0xff] %v254_v45 }
  0xe9   :  { %160 = vst [vmem:[#allocation2 + $0x38] sm:$0xff] %v151_v48  ;;  %266 = vst [vmem:[#allocation2 + $0x78] sm:$0xff] %v256_v49 }
  0xea   :  { %316 = shalt.err (!%p313_p4)
}
  0xeb   :  { %s317_s7 = scalar_lea.hbm %s411_s3, 2048 }
  0xec   :  { %p318_p5 = scmp.ne.s32.totalorder %s411_s3, %s317_s7  ;;  %p321_p6 = scmp.lt.u32.totalorder %s317_s7, %s411_s3 }
  0xee   :  { %p323_p7 = pnand %p321_p6, %p318_p5 }
  0xf0   :  { %326 = shalt.err (!%p323_p7)
}
  0xf1   :  { %s332_s12 = smov 256   ;;  %s333_s13 = smov 16  }
  0xf2   :  { %278 = dma.vmem_to_hbm [thread:$0]  %s273_s30, 2048, %s411_s3, [#allocation3], %s332_s12, %s332_s12, %s333_s13  }
  0xf3   :  { %327 = dma.done.wait [#allocation3], 2048  }
  0xf4   :  { %328 = vsyncadd [#allocation3], 4294965248 }
  0xf5   :  { %282 = vsyncpa [#allocation3], 1 }

</bundles_post_ra>
